<compile_context>
chip_gen: v6e
topology: v6e:2x2x1
jax: 0.10.0
libtpu: 0.0.40
codegen_flags: <defaults>
</compile_context>

<pallas_src>
import functools

import jax
import jax.numpy as jnp
import numpy as np
from jax import lax
from jax.experimental import pallas as pl
from jax.experimental.pallas import tpu as pltpu


def _mgu_gate_kernel(col_ref, w_ref, b_ref, h_ref, out_ref, *, Ch):
    """Fused gate kernel for one (batch, M-strip) block.

    col_ref: (Kc, Mt)  patches, matmul dtype (bf16/f32)        [lane-dense]
    w_ref  : (3*Ch, Kc) gate-structured fused weight, matmul dtype
    b_ref  : (3*Ch, 1)  f32 bias (b_ih for first 2*Ch rows, zeros after)
    h_ref  : (Ch, Mt)   f32 hidden state hx for the residual blend
    out_ref: (Ch, Mt)   f32 output                               [lane-dense]
    """
    # Single MXU matmul, f32 accumulation: (3Ch, Kc) @ (Kc, Mt) -> (3Ch, Mt).
    acc = jnp.dot(w_ref[...], col_ref[...], preferred_element_type=jnp.float32)
    acc = acc + b_ref[...]                      # lane-broadcast (3Ch,1)->(3Ch,Mt)

    # Gate math on (Ch, Mt) slabs — full 128-lane vregs, sublane-aligned slices.
    f = jax.nn.sigmoid(acc[:Ch, :])                         # ih0 + hh0 (+ bias)
    c = jnp.tanh(acc[Ch:2 * Ch, :] + f * acc[2 * Ch:, :])   # ih1 + f * hh1
    h = h_ref[...]                                          # f32 hx
    out_ref[...] = (c + f * (h - c)).astype(out_ref.dtype)


@functools.partial(jax.jit,
                   static_argnames=("kernel_size", "dilation", "m_block",
                                    "matmul_dtype"))
def conv_mgu_cell(x_nchw, hx_nchw, w_ih, w_hh, b_ih, *, kernel_size,
                  dilation=1, m_block=None, matmul_dtype=jnp.bfloat16):
    """ConvMGUCell forward (conv_dim=2).

    x_nchw : (B, Cin, H, W);  hx_nchw: (B, Ch, H, W)
    w_ih   : (K, K, Cin, 2*Ch) HWIO;  w_hh: (K, K, Ch, 2*Ch) HWIO;  b_ih: (2*Ch,)
    Returns (B, Ch, H, W), same as the PyTorch module.
    """
    B, Cin, H, W = x_nchw.shape
    Ch = hx_nchw.shape[1]
    K = kernel_size
    dil = dilation
    if K % 2 != 1:
        # even K would not give 'same' spatial output with pad = dil*(K-1)//2,
        # and the blend c + f*(hx - c) requires matching spatial shapes.
        raise ValueError("conv_mgu_cell requires an odd kernel_size")

    pad = (dil * (K - 1)) // 2
    Cc = Cin + Ch
    Kc = K * K * Cc
    M = H * W
    if m_block is None:
        m_block = 128 if (M % 128 == 0 and M > 128) else M
    if M % m_block != 0:
        raise ValueError("H*W must be divisible by m_block")
    Mt = m_block

    # ---- XLA-side patch extraction (fused under jit): NCHW concat -> zero-pad
    #      -> K*K shifted slices -> (B, Kc, M) lane-dense patch matrix. -------
    xh = jnp.concatenate([x_nchw, hx_nchw], axis=1).astype(jnp.float32)
    xhp = jnp.pad(xh, ((0, 0), (0, 0), (pad, pad), (pad, pad)))
    taps = [xhp[:, :, kh * dil:kh * dil + H, kw * dil:kw * dil + W]
            for kh in range(K) for kw in range(K)]            # each (B, Cc, H, W)
    col = jnp.stack(taps, axis=1).reshape(B, Kc, M).astype(matmul_dtype)

    # ---- Gate-structured fused weight, transposed to (3*Ch, Kc). -------------
    #   rows (contraction): tap-major, channel-minor, channels ordered [x, hx]
    #   cols: [0:Ch]   -> f-gate   (ih0 + hh0, fused since f = sigmoid(ih0+hh0))
    #         [Ch:2Ch] -> ih1 only (hidden-channel rows zeroed)
    #         [2Ch:3Ch]-> hh1 only (input-channel rows zeroed)
    w_ih = w_ih.astype(jnp.float32)
    w_hh = w_hh.astype(jnp.float32)
    zi = jnp.zeros((K, K, Cin, Ch), jnp.float32)
    zh = jnp.zeros((K, K, Ch, Ch), jnp.float32)
    w_f = jnp.concatenate([w_ih[..., :Ch], w_hh[..., :Ch]], axis=2)
    w_i1 = jnp.concatenate([w_ih[..., Ch:], zh], axis=2)
    w_h1 = jnp.concatenate([zi, w_hh[..., Ch:]], axis=2)
    w_fused = jnp.concatenate([w_f, w_i1, w_h1], axis=3).reshape(Kc, 3 * Ch)
    wT = jnp.transpose(w_fused).astype(matmul_dtype)           # (3*Ch, Kc)

    b_fused = jnp.concatenate(
        [b_ih.astype(jnp.float32), jnp.zeros((Ch,), jnp.float32)]
    ).reshape(3 * Ch, 1)

    # hx for the blend, in the same (Ch, M) lane-dense / NCHW-compatible layout.
    hx_flat = hx_nchw.astype(jnp.float32).reshape(B, Ch, M)

    # Explicit scoped-VMEM budget derived from the (double-buffered) block sizes,
    # with a generous floor — portable across v5e/v6e/v7x scoped defaults.
    esz = jnp.dtype(matmul_dtype).itemsize
    blk_bytes = (2 * Kc * Mt * esz            # col blocks (double buffered)
                 + 2 * Ch * Mt * 4            # hx blocks
                 + 2 * Ch * Mt * 4            # out blocks
                 + 2 * 3 * Ch * max(Kc, 128) * esz   # fused weight
                 + 2 * 3 * Ch * 128 * 4)             # bias
    vmem_limit = int(min(64 * 1024 * 1024, max(8 * 1024 * 1024, 8 * blk_bytes)))

    kernel = functools.partial(_mgu_gate_kernel, Ch=Ch)

    out = pl.pallas_call(
        kernel,
        out_shape=jax.ShapeDtypeStruct((B, Ch, M), jnp.float32),
        grid_spec=pltpu.PrefetchScalarGridSpec(
            num_scalar_prefetch=0,
            grid=(B, M // Mt),
            in_specs=[
                pl.BlockSpec((None, Kc, Mt), lambda b, m: (b, 0, m)),
                pl.BlockSpec((3 * Ch, Kc), lambda b, m: (0, 0)),
                pl.BlockSpec((3 * Ch, 1), lambda b, m: (0, 0)),
                pl.BlockSpec((None, Ch, Mt), lambda b, m: (b, 0, m)),
            ],
            out_specs=pl.BlockSpec((None, Ch, Mt), lambda b, m: (b, 0, m)),
        ),
        compiler_params=pltpu.CompilerParams(
            dimension_semantics=("parallel", "parallel"),
            vmem_limit_bytes=vmem_limit),
    )(col, wT, b_fused, hx_flat)

    # (B, Ch, H*W) -> (B, Ch, H, W): pure reshape, no transpose.
    return out.reshape(B, Ch, H, W)


def _reference(x_nchw, hx_nchw, w_ih, w_hh, b_ih, *, kernel_size, dilation=1):
    """Pure-JAX reference using lax.conv_general_dilated (mirrors nn.Conv2d)."""
    K = kernel_size
    pad = (dilation * (K - 1)) // 2
    x = jnp.transpose(x_nchw, (0, 2, 3, 1))
    hx = jnp.transpose(hx_nchw, (0, 2, 3, 1))
    dn = ('NHWC', 'HWIO', 'NHWC')
    ih = lax.conv_general_dilated(x, w_ih, (1, 1), [(pad, pad), (pad, pad)],
                                  rhs_dilation=(dilation, dilation),
                                  dimension_numbers=dn) + b_ih
    hh = lax.conv_general_dilated(hx, w_hh, (1, 1), [(pad, pad), (pad, pad)],
                                  rhs_dilation=(dilation, dilation),
                                  dimension_numbers=dn)
    Ch = hx.shape[-1]
    f = jax.nn.sigmoid(ih[..., :Ch] + hh[..., :Ch])
    c = jnp.tanh(ih[..., Ch:] + f * hh[..., Ch:])
    out = c + f * (hx - c)
    return jnp.transpose(out, (0, 3, 1, 2))


if __name__ == "__main__":
    # Module-consistent small shapes: batch=2, input_size=4, hidden_size=8,
    # spatial 16x16, kernel_size=3, bias=True.
    B, Cin, Ch, H, W, K = 2, 4, 8, 16, 16, 3

    key = jax.random.PRNGKey(0)
    k1, k2, k3, k4, k5 = jax.random.split(key, 5)

    # Deterministic synthetic parameters in HWIO layout.
    # TODO(synk): the module's orthogonal+xavier parameter init is not
    # reproduced (values are synthetic); only the forward pass is implemented.
    fan_ih = Cin * K * K + 2 * Ch * K * K
    fan_hh = Ch * K * K + 2 * Ch * K * K
    w_ih = jax.random.normal(k1, (K, K, Cin, 2 * Ch), jnp.float32) * jnp.sqrt(2.0 / fan_ih)
    w_hh = jax.random.normal(k2, (K, K, Ch, 2 * Ch), jnp.float32) * jnp.sqrt(2.0 / fan_hh)
    b_ih = jax.random.normal(k5, (2 * Ch,), jnp.float32) * 0.1

    x = jax.random.normal(k3, (B, Cin, H, W), jnp.float32)
    hx = jax.random.normal(k4, (B, Ch, H, W), jnp.float32)

    # ---- dilation = 1 ----
    ref = _reference(x, hx, w_ih, w_hh, b_ih, kernel_size=K, dilation=1)

    # 1) exact f32 matmul path (grid = (B, 2), Mt = 128).
    out_f32 = conv_mgu_cell(x, hx, w_ih, w_hh, b_ih, kernel_size=K, dilation=1,
                            matmul_dtype=jnp.float32)
    jax.block_until_ready(out_f32)
    np.testing.assert_allclose(np.asarray(out_f32), np.asarray(ref),
                               rtol=1e-4, atol=1e-4)

    # 2) default bf16 matmul operands (f32 accumulation / gates / blend).
    out_bf16 = conv_mgu_cell(x, hx, w_ih, w_hh, b_ih, kernel_size=K, dilation=1)
    jax.block_until_ready(out_bf16)
    np.testing.assert_allclose(np.asarray(out_bf16), np.asarray(ref),
                               rtol=5e-2, atol=5e-2)

    # 3) single M-block per batch element (grid = (B,)), f32.
    out_full = conv_mgu_cell(x, hx, w_ih, w_hh, b_ih, kernel_size=K, dilation=1,
                             m_block=H * W, matmul_dtype=jnp.float32)
    jax.block_until_ready(out_full)
    np.testing.assert_allclose(np.asarray(out_full), np.asarray(ref),
                               rtol=1e-4, atol=1e-4)

    # ---- dilation = 2 (pad = 2, still 'same' output) ----
    ref_d2 = _reference(x, hx, w_ih, w_hh, b_ih, kernel_size=K, dilation=2)
    out_d2 = conv_mgu_cell(x, hx, w_ih, w_hh, b_ih, kernel_size=K, dilation=2,
                           matmul_dtype=jnp.float32)
    jax.block_until_ready(out_d2)
    np.testing.assert_allclose(np.asarray(out_d2), np.asarray(ref_d2),
                               rtol=1e-4, atol=1e-4)

    print("KERNEL_OK")
</pallas_src>

<mosaic_0001>
module attributes {stable_mosaic.version = 11 : i64} {
  func.func @_mgu_gate_kernel(%arg0: i32, %arg1: i32, %arg2: memref<1x108x128xf32, #tpu.memory_space<vmem>>, %arg3: memref<24x108xf32, #tpu.memory_space<vmem>>, %arg4: memref<24x1xf32, #tpu.memory_space<vmem>>, %arg5: memref<1x8x128xf32, #tpu.memory_space<vmem>>, %arg6: memref<1x8x128xf32, #tpu.memory_space<vmem>>) attributes {dimension_semantics = [#tpu.dimension_semantics<parallel>, #tpu.dimension_semantics<parallel>], iteration_bounds = array<i64: 2, 2>, scalar_prefetch = 0 : i64, scratch_operands = 0 : i64, tpu.core_type = #tpu.core_type<tc>, window_params = [{transform_indices = @transform_0, window_bounds = array<i64: 1, 108, 128>}, {pipeline_mode = #tpu.pipeline_mode<synchronous>, transform_indices = @transform_1, window_bounds = array<i64: 24, 108>}, {pipeline_mode = #tpu.pipeline_mode<synchronous>, transform_indices = @transform_2, window_bounds = array<i64: 24, 1>}, {transform_indices = @transform_3, window_bounds = array<i64: 1, 8, 128>}, {transform_indices = @transform_4, window_bounds = array<i64: 1, 8, 128>}]} {
    %c0 = arith.constant 0 : index
    %c0_0 = arith.constant 0 : index
    %0 = vector.load %arg3[%c0, %c0_0] : memref<24x108xf32, #tpu.memory_space<vmem>>, vector<24x108xf32>
    %c0_1 = arith.constant 0 : index
    %c0_2 = arith.constant 0 : index
    %c0_3 = arith.constant 0 : index
    %1 = vector.load %arg2[%c0_1, %c0_2, %c0_3] : memref<1x108x128xf32, #tpu.memory_space<vmem>>, vector<1x108x128xf32>
    %2 = vector.shape_cast %1 : vector<1x108x128xf32> to vector<108x128xf32>
    %cst = arith.constant dense<0.000000e+00> : vector<24x128xf32>
    %3 = tpu.matmul %0, %2, %cst {dimension_numbers = #tpu.dot_dimension_numbers<[1], [0], [0], [1], [0, 0, 1, 1], [], []>} : vector<24x108xf32>, vector<108x128xf32>, vector<24x128xf32> -> vector<24x128xf32>
    %c0_4 = arith.constant 0 : index
    %c0_5 = arith.constant 0 : index
    %4 = vector.load %arg4[%c0_4, %c0_5] : memref<24x1xf32, #tpu.memory_space<vmem>>, vector<24x1xf32>
    %5 = vector.broadcast %4 : vector<24x1xf32> to vector<24x128xf32>
    %6 = arith.addf %3, %5 : vector<24x128xf32>
    %7 = vector.extract_strided_slice %6 {offsets = [0, 0], sizes = [8, 128], strides = [1, 1]} : vector<24x128xf32> to vector<8x128xf32>
    %8 = arith.negf %7 : vector<8x128xf32>
    %9 = math.exp %8 : vector<8x128xf32>
    %cst_6 = arith.constant 1.000000e+00 : f32
    %10 = vector.broadcast %cst_6 : f32 to vector<8x128xf32>
    %11 = arith.addf %10, %9 : vector<8x128xf32>
    %12 = arith.divf %10, %11 : vector<8x128xf32>
    %13 = vector.extract_strided_slice %6 {offsets = [8, 0], sizes = [8, 128], strides = [1, 1]} : vector<24x128xf32> to vector<8x128xf32>
    %14 = vector.extract_strided_slice %6 {offsets = [16, 0], sizes = [8, 128], strides = [1, 1]} : vector<24x128xf32> to vector<8x128xf32>
    %15 = arith.mulf %12, %14 : vector<8x128xf32>
    %16 = arith.addf %13, %15 : vector<8x128xf32>
    %17 = math.tanh %16 : vector<8x128xf32>
    %c0_7 = arith.constant 0 : index
    %c0_8 = arith.constant 0 : index
    %c0_9 = arith.constant 0 : index
    %18 = vector.load %arg5[%c0_7, %c0_8, %c0_9] : memref<1x8x128xf32, #tpu.memory_space<vmem>>, vector<1x8x128xf32>
    %19 = vector.shape_cast %18 : vector<1x8x128xf32> to vector<8x128xf32>
    %20 = arith.subf %19, %17 : vector<8x128xf32>
    %21 = arith.mulf %12, %20 : vector<8x128xf32>
    %22 = arith.addf %17, %21 : vector<8x128xf32>
    %c0_10 = arith.constant 0 : index
    %c0_11 = arith.constant 0 : index
    %c0_12 = arith.constant 0 : index
    %23 = vector.load %arg6[%c0_10, %c0_11, %c0_12] : memref<1x8x128xf32, #tpu.memory_space<vmem>>, vector<1x8x128xf32>
    %24 = vector.shape_cast %23 : vector<1x8x128xf32> to vector<8x128xf32>
    %25 = vector.shape_cast %22 : vector<8x128xf32> to vector<1x8x128xf32>
    tpu.vector_store %arg6[%c0_10, %c0_11, %c0_12], %25 {strides = array<i32>} : memref<1x8x128xf32, #tpu.memory_space<vmem>>, vector<1x8x128xf32>,
    return
  }
  func.func @transform_0(%arg0: i32, %arg1: i32) -> (i32, i32, i32) {
    %c0_i32 = arith.constant 0 : i32
    %c0_i32_0 = arith.constant 0 : i32
    return %arg0, %c0_i32, %arg1 : i32, i32, i32
  }
  func.func @transform_1(%arg0: i32, %arg1: i32) -> (i32, i32) {
    %c0_i32 = arith.constant 0 : i32
    %c0_i32_0 = arith.constant 0 : i32
    %c0_i32_1 = arith.constant 0 : i32
    return %c0_i32, %c0_i32_0 : i32, i32
  }
  func.func @transform_2(%arg0: i32, %arg1: i32) -> (i32, i32) {
    %c0_i32 = arith.constant 0 : i32
    %c0_i32_0 = arith.constant 0 : i32
    %c0_i32_1 = arith.constant 0 : i32
    return %c0_i32, %c0_i32_0 : i32, i32
  }
  func.func @transform_3(%arg0: i32, %arg1: i32) -> (i32, i32, i32) {
    %c0_i32 = arith.constant 0 : i32
    %c0_i32_0 = arith.constant 0 : i32
    return %arg0, %c0_i32, %arg1 : i32, i32, i32
  }
  func.func @transform_4(%arg0: i32, %arg1: i32) -> (i32, i32, i32) {
    %c0_i32 = arith.constant 0 : i32
    %c0_i32_0 = arith.constant 0 : i32
    return %arg0, %c0_i32, %arg1 : i32, i32, i32
  }
}

</mosaic_0001>

<bundles_post_ra>
// kernel: conv_mgu_cell.1
= control target key start
LH: loop header
LB: loop body
LE: loop exit
PB: predicated region body
PF: predicated region fallthrough
CT: control target
= control target key end

     0   :  { %s842_s15 = smov 0   ;;  %s844_s16 = smov 0   ;;  %s1004_s0 = inlined_call_operand.vmem [shape: f32[2,108,256], index: 0, kind: input, shape index: {}]   ;;  %s1005_s1 = inlined_call_operand.vmem [shape: f32[24,108], index: 1, kind: input, shape index: {}]   ;;  %s1006_s2 = inlined_call_operand.vmem [shape: f32[24,1], index: 2, kind: input, shape index: {}]   ;;  %s1007_s3 = inlined_call_operand.vmem [shape: f32[2,8,256], index: 3, kind: input, shape index: {}]   ;;  %s1008_s4 = inlined_call_operand.vmem [shape: f32[2,8,256], index: 4, kind: output, shape index: {}]  }
   0x1   :  { %s846_s17 = smov 0   ;;  %s848_s18 = smov 0  }
   0x2   :  { %s850_s19 = smov 0   ;;  %s852_s20 = smov 0  }
   0x3   :  { %s854_s21 = smov 0  }
   0x4 LB: > { %s23_s22 = sadd.s32 1, %s804_s19  ;;  %s26_s23 = sadd.s32 1, %s808_s20  ;;  %s812_s21 = sphi %s854_s21, %s14_s21   ;;  %s808_s20 = sphi %s852_s20, %s1014_s20   ;;  %s804_s19 = sphi %s850_s19, %s1013_s19   ;;  %s800_s18 = sphi %s848_s18, %s1012_s18   ;;  %s796_s17 = sphi %s846_s17, %s1011_s17   ;;  %s792_s16 = sphi %s844_s16, %s1010_s16   ;;  %s788_s15 = sphi %s842_s15, %s1009_s15  }
   0x5   : > { %p24_p0 = scmp.ge.s32.totalorder %s23_s22, 2  ;;  %p42_p1 = scmp.ne.s32.totalorder %s792_s16, %s788_s15 }
   0x6   : > { %p43_p2 = scmp.eq.s32.totalorder %s812_s21, 0  ;;  %s35_s27 = sadd.s32 1, %s792_s16 }
   0x7   : > { %s1016_s22 = smov (%p24_p0, %s23_s22), 0  ;;  %s1018_s23 = smov (!%p24_p0, %s26_s23), %s808_s20 }
   0x8   : > { %p44_p3 = por %p43_p2, %p42_p1  ;;  %p28_p4 = scmp.ge.s32.totalorder %s1018_s23, 2 }
   0x9   : > { %s31_s24 = ssub.s32 %s804_s19, %s1016_s22  ;;  %p592_p6 = scmp.ge.s32.totalorder %s812_s21, 4 }
   0xa   : > { %s1020_s23 = smov (%p28_p4, %s1018_s23), 0 }
   0xb   : > { %s30_s25 = ssub.s32 %s808_s20, %s1020_s23  ;;  %172 = sbr.rel (%p592_p6) target bundleno = 30 (0x1e), region = 24 }
   0xc   : > { %s32_s26 = sor.u32 %s31_s24, %s30_s25 }
   0xd   : > { %p33_p5 = scmp.eq.s32.totalorder %s32_s26, 0 }
   0xf   : > { %s893_s28 = scalar_select %p33_p5, %s792_s16, %s35_s27  }
  0x10   : > { %175 = sbr.rel (!%p44_p3) target bundleno = 30 (0x1e), region = 28  ;;  %s177_s29 = sand.u32 (%p44_p3), 1, %s792_s16  }
  0x11   : > { %s689_s30 = smul.u32 (%p44_p3), 28, %s808_s20 }
  0x12   : > { %s688_s5 = smul.u32 (%p44_p3), 112, %s177_s29 }
  0x13   : > { %s181_s6 = sadd.s32 (%p44_p3), %s804_s19, %s689_s30 }
  0x14   : > { %s593_s7 = sshll.u32 (%p44_p3), %s181_s6, 3  ;;  %s179_s11 = scalar_lea.vmem (%p44_p3), [#allocation2], %s688_s5 }
  0x15   : > { %s183_s10 = scalar_lea.vmem %s1004_s0, %s593_s7 }
  0x16   : > { %v238_v0 = vld [vmem:[%s183_s10] sm:$0xff]  ;;  %v240_v1 = vld [vmem:[%s183_s10 + $0x10] sm:$0xff] }
  0x17   : > { %v242_v2 = vld [vmem:[%s183_s10 + $0x20] sm:$0xff]  ;;  %239 = vst [vmem:[%s179_s11] sm:$0xff] %v238_v0  ;;  %241 = vst [vmem:[%s179_s11 + $0x8] sm:$0xff] %v240_v1  ;;  %v244_v3 = vld [vmem:[%s183_s10 + $0x30] sm:$0xff] }
  0x18   : > { %243 = vst [vmem:[%s179_s11 + $0x10] sm:$0xff] %v242_v2  ;;  %v246_v4 = vld [vmem:[%s183_s10 + $0x40] sm:$0xff]  ;;  %v248_v5 = vld [vmem:[%s183_s10 + $0x50] sm:$0xff]  ;;  %245 = vst [vmem:[%s179_s11 + $0x18] sm:$0xff] %v244_v3 }
  0x19   : > { %247 = vst [vmem:[%s179_s11 + $0x20] sm:$0xff] %v246_v4  ;;  %249 = vst [vmem:[%s179_s11 + $0x28] sm:$0xff] %v248_v5  ;;  %v250_v6 = vld [vmem:[%s183_s10 + $0x60] sm:$0xff]  ;;  %v252_v7 = vld [vmem:[%s183_s10 + $0x70] sm:$0xff] }
  0x1a   : > { %v254_v8 = vld [vmem:[%s183_s10 + $0x80] sm:$0xff]  ;;  %251 = vst [vmem:[%s179_s11 + $0x30] sm:$0xff] %v250_v6  ;;  %253 = vst [vmem:[%s179_s11 + $0x38] sm:$0xff] %v252_v7  ;;  %v256_v9 = vld [vmem:[%s183_s10 + $0x90] sm:$0xff] }
  0x1b   : > { %255 = vst [vmem:[%s179_s11 + $0x40] sm:$0xff] %v254_v8  ;;  %v258_v10 = vld [vmem:[%s183_s10 + $0xa0] sm:$0xff]  ;;  %v260_v11 = vld [vmem:[%s183_s10 + $0xb0] sm:$0xff]  ;;  %257 = vst [vmem:[%s179_s11 + $0x48] sm:$0xff] %v256_v9 }
  0x1c   : > { %259 = vst [vmem:[%s179_s11 + $0x50] sm:$0xff] %v258_v10  ;;  %261 = vst [vmem:[%s179_s11 + $0x58] sm:$0xff] %v260_v11  ;;  %v262_v12 = vld [vmem:[%s183_s10 + $0xc0] sm:$0xff]  ;;  %v264_v13 = vld [vmem:[%s183_s10 + $0xd0] sm:$0xff] }
  0x1d   : > { %263 = vst [vmem:[%s179_s11 + $0x60] sm:$0xff] %v262_v12  ;;  %265 = vst [vmem:[%s179_s11 + $0x68] sm:$0xff] %v264_v13 }
  0x1e PF: > { %p594_p7 = scmp.ge.s32.totalorder %s812_s21, 1  ;;  %p281_p8 = scmp.lt.s32.totalorder %s812_s21, 5 }
  0x20   : > { %p282_p9 = pnand %p594_p7, %p281_p8 }
  0x21   : > { %s288_s12 = sand.u32 (!%p282_p9), 1, %s788_s15   ;;  %p324_p10 = scmp.lt.s32.totalorder (!%p282_p9), %s800_s18, 1 }
  0x22   : > { %285 = sbr.rel (%p282_p9) target bundleno = 323 (0x143), region = 70  ;;  %p326_p11 = scmp.lt.s32.totalorder (!%p282_p9), %s796_s17, 1 }
  0x23   : > { %s690_s13 = smul.u32 (!%p282_p9), 112, %s288_s12 }
  0x25   : > { %s917_s26 = scalar_lea.vmem (!%p282_p9), [#allocation2], %s690_s13 }
  0x27   : > { %v814_v14 = vmov 0.0   ;;  %v357_v15 = vld [vmem:[%s1006_s2] sm:$0xff]  ;;  %vm385_vm0 = vcmask 1043456   ;;  %vm815_vm1 = vmmov 0   ;;  %v358_v16 = vld [vmem:[%s1006_s2 + $0x8] sm:$0xff]  ;;  %v816_v17 = vmov 0  }
  0x28   : > { %623 = vmatprep.subr.mxu0 %v814_v14  ;;  %660 = vmatprep.subr.mxu1 %v814_v14  ;;  %v356_v18 = vld [vmem:[%s917_s26 + $0x68] sm:$0xf]  ;;  %v355_v19 = vld [vmem:[%s917_s26 + $0x60] sm:$0xff]  ;;  %v354_v20 = vld [vmem:[%s917_s26 + $0x58] sm:$0xff]  ;;  %vm375_vm2 = vcmask 883712   ;;  %s1022_s18 = smov (!%p324_p10, %s800_s18), 1 }
  0x29   : > { %651 = vmatprep.mubr.msk.f32.mxu0 %vm815_vm1, %v814_v14  ;;  %654 = vmatprep.mubr.msk.f32.mxu1 %vm815_vm1, %v814_v14  ;;  %v353_v21 = vld [vmem:[%s917_s26 + $0x50] sm:$0xff]  ;;  %v352_v22 = vld [vmem:[%s917_s26 + $0x48] sm:$0xff]  ;;  %v351_v23 = vld [vmem:[%s917_s26 + $0x40] sm:$0xff]  ;;  %s1024_s17 = smov (!%p326_p11, %s796_s17), 1  ;;  %s595_s10 = sshll.u32 %s1022_s18, 1 }
  0x2a   : > { %750 = vset.pattern.permute.xlu0 %v816_v17  ;;  %751 = vset.pattern.permute.xlu1 %v816_v17  ;;  %v350_v24 = vld [vmem:[%s917_s26 + $0x38] sm:$0xff]  ;;  %v349_v25 = vld [vmem:[%s917_s26 + $0x30] sm:$0xff]  ;;  %v348_v26 = vld [vmem:[%s917_s26 + $0x28] sm:$0xff]  ;;  %s329_s11 = sadd.s32 %s595_s10, %s1024_s17 }
  0x2b   : > { %362 = vperm.xlu0 %750, %v357_v15   ;;  %367 = vperm.xlu1 %751, %v358_v16   ;;  %v347_v27 = vld [vmem:[%s917_s26 + $0x20] sm:$0xff]  ;;  %v346_v28 = vld [vmem:[%s917_s26 + $0x18] sm:$0xff]  ;;  %v345_v29 = vld [vmem:[%s917_s26 + $0x10] sm:$0xff]  ;;  %s596_s12 = sshll.u32 %s329_s11, 3 }
  0x2c   : > { %624 = vmatpush3.msk.msra.mxu0 %vm385_vm0, %v356_v18  ;;  %674 = vmatpush3.msk.msra.mxu1 %vm385_vm0, %v356_v18  ;;  %v344_v30 = vld [vmem:[%s917_s26 + $0x8] sm:$0xff]  ;;  %v343_v31 = vld [vmem:[%s917_s26] sm:$0xff]  ;;  %s331_s24 = scalar_lea.vmem %s1007_s3, %s596_s12  ;;  %s339_s26 = scalar_lea.vmem %s1008_s4, %s596_s12 }
  0x2d   : > { %625 = vmatprep.subr.mxu0 %v814_v14  ;;  %661 = vmatprep.subr.mxu1 %v814_v14  ;;  %v340_v32 = vld [vmem:[%s1005_s1] sm:$0xff]  ;;  %v341_v33 = vld [vmem:[%s1005_s1 + $0x8] sm:$0xff]  ;;  %v359_v34 = vld [vmem:[%s1006_s2 + $0x10] sm:$0xff] }
  0x2e   : > { %626 = vmatpush3.msra.mxu0 %v355_v19  ;;  %675 = vmatpush3.msra.mxu1 %v355_v19  ;;  %v342_v35 = vld [vmem:[%s1005_s1 + $0x10] sm:$0xff]  ;;  %v478_v54 = vld [vmem:[%s331_s24] sm:$0xff] }
  0x2f   : > { %627 = vmatprep.subr.mxu0 %v814_v14  ;;  %662 = vmatprep.subr.mxu1 %v814_v14 }
  0x30   : > { %628 = vmatpush3.msra.mxu0 %v354_v20  ;;  %676 = vmatpush3.msra.mxu1 %v354_v20 }
  0x31   : > { %629 = vmatprep.subr.mxu0 %v814_v14  ;;  %663 = vmatprep.subr.mxu1 %v814_v14 }
  0x32   : > { %630 = vmatpush3.msra.mxu0 %v353_v21  ;;  %677 = vmatpush3.msra.mxu1 %v353_v21 }
  0x33   : > { %631 = vmatprep.subr.mxu0 %v814_v14  ;;  %664 = vmatprep.subr.mxu1 %v814_v14 }
  0x34   : > { %632 = vmatpush3.msra.mxu0 %v352_v22  ;;  %678 = vmatpush3.msra.mxu1 %v352_v22 }
  0x35   : > { %633 = vmatprep.subr.mxu0 %v814_v14  ;;  %665 = vmatprep.subr.mxu1 %v814_v14 }
  0x36   : > { %634 = vmatpush3.msra.mxu0 %v351_v23  ;;  %679 = vmatpush3.msra.mxu1 %v351_v23 }
  0x37   : > { %635 = vmatprep.subr.mxu0 %v814_v14  ;;  %666 = vmatprep.subr.mxu1 %v814_v14 }
  0x38   : > { %636 = vmatpush3.msra.mxu0 %v350_v24  ;;  %680 = vmatpush3.msra.mxu1 %v350_v24 }
  0x39   : > { %637 = vmatprep.subr.mxu0 %v814_v14  ;;  %667 = vmatprep.subr.mxu1 %v814_v14 }
  0x3a   : > { %638 = vmatpush3.msra.mxu0 %v349_v25  ;;  %681 = vmatpush3.msra.mxu1 %v349_v25 }
  0x3b   : > { %639 = vmatprep.subr.mxu0 %v814_v14  ;;  %668 = vmatprep.subr.mxu1 %v814_v14 }
  0x3c   : > { %640 = vmatpush3.msra.mxu0 %v348_v26  ;;  %682 = vmatpush3.msra.mxu1 %v348_v26 }
  0x3d   : > { %641 = vmatprep.subr.mxu0 %v814_v14  ;;  %669 = vmatprep.subr.mxu1 %v814_v14 }
  0x3e   : > { %642 = vmatpush3.msra.mxu0 %v347_v27  ;;  %683 = vmatpush3.msra.mxu1 %v347_v27 }
  0x3f   : > { %643 = vmatprep.subr.mxu0 %v814_v14  ;;  %670 = vmatprep.subr.mxu1 %v814_v14 }
  0x40   : > { %644 = vmatpush3.msra.mxu0 %v346_v28  ;;  %684 = vmatpush3.msra.mxu1 %v346_v28 }
  0x41   : > { %645 = vmatprep.subr.mxu0 %v814_v14  ;;  %671 = vmatprep.subr.mxu1 %v814_v14 }
  0x42   : > { %646 = vmatpush3.msra.mxu0 %v345_v29  ;;  %685 = vmatpush3.msra.mxu1 %v345_v29 }
  0x43   : > { %647 = vmatprep.subr.mxu0 %v814_v14  ;;  %672 = vmatprep.subr.mxu1 %v814_v14 }
  0x44   : > { %648 = vmatpush3.msra.mxu0 %v344_v30  ;;  %686 = vmatpush3.msra.mxu1 %v344_v30 }
  0x45   : > { %649 = vmatprep.subr.mxu0 %v814_v14  ;;  %673 = vmatprep.subr.mxu1 %v814_v14 }
  0x46   : > { %650 = vmatpush3.msra.mxu0 %v343_v31  ;;  %687 = vmatpush3.msra.mxu1 %v343_v31 }
  0x47   : > { %652 = vmatmul.mubr.msk.f32.vlgmr.msra.gmra.mxu0 %vm375_vm2, %v340_v32  ;;  %655 = vmatmul.mubr.msk.f32.vlgmr.msra.gmra.mxu1 %vm375_vm2, %v341_v33 }
  0x48   : > { %657 = vmatprep.mubr.msk.f32.mxu1 %vm815_vm1, %v814_v14  ;;  %372 = vperm.xlu0 %750, %v359_v34  }
  0x4b   : > { %658 = vmatmul.mubr.msk.f32.gmra.mxu1 %vm375_vm2, %v342_v35 }
  0xa6   : > { %v363_v36 = vpop.permute.xlu0 %362  ;;  %v368_v48 = vpop.permute.xlu1 %367 }
  0xc3   : > { %v373_v47 = vpop.permute.xlu0 %372 }
 0x107   : > { %v455_v37 = vpop.f32.mrf.mxu0  ;;  %v460_v38 = vpop.f32.mrf.mxu1 }
 0x108   : > { %v456_v39 = vadd.f32 %v455_v37, %v363_v36  ;;  %v461_v52 = vadd.f32 %v460_v38, %v368_v48 }
 0x109   : > { %v653_v40 = vpop.f32.mrf.mxu0  ;;  %v656_v41 = vpop.f32.mrf.mxu1 }
 0x10a   : > { %v603_v42 = vmul.f32 -1.442695, %v456_v39 }
 0x10b   : > { %v465_v43 = vpop.f32.mrf.mxu1 }
 0x10c   : > { %752 = vpow2.f32 %v603_v42  ;;  %v466_v49 = vadd.f32 %v465_v43, %v373_v47 }
 0x10d   : > { %v659_v44 = vpop.f32.mrf.mxu1 }
 0x119   : > { %v753_v45 = vpop.eup %752 }
 0x11a   : > { %v472_v46 = vadd.f32 1.0, %v753_v45 }
 0x11c   : > { %754 = vrcp.f32 %v472_v46 }
 0x129   : > { %v755_v50 = vpop.eup %754 }
 0x12a   : > { %v475_v51 = vmul.f32 %v755_v50, %v466_v49 }
 0x12c   : > { %v476_v53 = vadd.f32 %v475_v51, %v461_v52 }
 0x12e   : > { %756 = vtanh.f32 %v476_v53 }
 0x13b   : > { %v757_v55 = vpop.eup %756 }
 0x13c   : > { %v479_v56 = vsub.f32 %v478_v54, %v757_v55 }
 0x13e   : > { %v480_v57 = vmul.f32 %v755_v50, %v479_v56 }
 0x140   : > { %v481_v58 = vadd.f32 %v757_v55, %v480_v57 }
 0x142   : > { %482 = vst [vmem:[%s339_s26] sm:$0xff] %v481_v58 }
 0x143 PF: > { %s14_s21 = sadd.s32 1, %s812_s21   ;;  %s1009_s15 = smov %s792_s16 }
 0x144   : > { %p11_p12 = scmp.ge.s32.totalorder %s14_s21, 6   ;;  %s1010_s16 = smov %s893_s28 }
 0x145   : > { %s1011_s17 = smov %s804_s19  ;;  %s1012_s18 = smov %s808_s20 }
 0x146   : > { %s1013_s19 = smov %s1016_s22  ;;  %s1014_s20 = smov %s1020_s23 }
 0x147   :  { %13 = sbr.rel (!%p11_p12) target bundleno = 4 (0x4), region = 112 }

</bundles_post_ra>
